<compile_context>
chip_gen: v6e
topology: v6e:2x2x1
jax: 0.10.0
libtpu: 0.0.40
codegen_flags: <defaults>
</compile_context>

<pallas_src>
import functools

import jax
import jax.numpy as jnp
from jax.experimental import pallas as pl
from jax.experimental.pallas import tpu as pltpu


def _round_up(x, m):
    return ((x + m - 1) // m) * m


def _default_tile_m(n, c, itemsize, *,
                    input_buffer_budget_bytes=16 * 1024 * 1024,
                    max_tile_m=1024):
    """Largest batch tile whose double-buffered input tiles fit a VMEM budget.

    2 operands x 2 pipeline buffers of (tile_m, c) in the input dtype; the budget
    leaves headroom (vs. v7x's 64 MiB physical VMEM) for the f32 intermediates the
    kernel body creates.
    """
    per_row_bytes = 2 * 2 * c * itemsize
    tile_m = max(8, (input_buffer_budget_bytes // per_row_bytes) // 8 * 8)
    tile_m = min(tile_m, max_tile_m)          # diminishing returns past ~512-1024 rows
    tile_m = min(tile_m, _round_up(n, 8))     # don't exceed (padded) batch
    return max(8, tile_m)


def _soft_entropy_kernel(x_ref, t_ref, o_ref, *, n_total, tile_m, need_mask):
    x = x_ref[...].astype(jnp.float32)   # (TM, C) logits (inputs)
    t = t_ref[...].astype(jnp.float32)   # (TM, C) logits (targets)

    # Stable log-sum-exp of inputs, per row.
    x_max = jnp.max(x, axis=1, keepdims=True)
    x_sh = x - x_max
    lse = jnp.log(jnp.sum(jnp.exp(x_sh), axis=1, keepdims=True))        # (TM, 1)

    # softmax(targets) folded into the loss:
    #   sum_c p_c * (lse - x_sh_c) = lse - (sum_c t_exp_c * x_sh_c) / (sum_c t_exp_c)
    t_max = jnp.max(t, axis=1, keepdims=True)
    t_exp = jnp.exp(t - t_max)
    t_sum = jnp.sum(t_exp, axis=1, keepdims=True)                       # (TM, 1)
    tx_sum = jnp.sum(t_exp * x_sh, axis=1, keepdims=True)               # (TM, 1)

    # Exact divide over only (TM, 1) elements: negligible and hidden under DMA.
    row_loss = lse - tx_sum / t_sum                                     # (TM, 1)

    if need_mask:
        # Mask padded tail rows (grid overshoots N); padded-garbage rows may be
        # NaN/Inf but jnp.where selects element-wise so valid rows are untouched.
        i = pl.program_id(0)
        row_ids = i * tile_m + jax.lax.broadcasted_iota(jnp.int32, (tile_m, 1), 0)
        row_loss = jnp.where(row_ids < n_total, row_loss, 0.0)

    o_ref[...] = row_loss


def soft_entropy(inputs, targets, *, tile_m=None,
                 vmem_limit_bytes=48 * 1024 * 1024):
    assert inputs.shape == targets.shape and inputs.ndim == 2
    n, c = inputs.shape
    itemsize = jnp.dtype(inputs.dtype).itemsize
    if tile_m is None:
        tile_m = _default_tile_m(n, c, itemsize)

    num_tiles = pl.cdiv(n, tile_m)
    n_pad = num_tiles * tile_m
    need_mask = (n % tile_m) != 0

    kernel = functools.partial(
        _soft_entropy_kernel, n_total=n, tile_m=tile_m, need_mask=need_mask)

    cost = pl.CostEstimate(
        flops=10 * n * c,
        transcendentals=2 * n * c,
        bytes_accessed=2 * n * c * itemsize + n_pad * 4,
    )

    row_losses = pl.pallas_call(
        kernel,
        out_shape=jax.ShapeDtypeStruct((n_pad, 1), jnp.float32),
        grid=(num_tiles,),
        in_specs=[
            pl.BlockSpec((tile_m, c), lambda i: (i, 0)),
            pl.BlockSpec((tile_m, c), lambda i: (i, 0)),
        ],
        out_specs=pl.BlockSpec((tile_m, 1), lambda i: (i, 0)),
        compiler_params=pltpu.CompilerParams(
            dimension_semantics=("parallel",),   # independent tiles -> megacore on v7x
            vmem_limit_bytes=vmem_limit_bytes,   # raise v5e's 16 MiB scoped default
        ),
        cost_estimate=cost,
    )(inputs, targets)

    # .mean(0).sum()  ==  (sum of per-row cross-entropies) / N
    return jnp.sum(row_losses) / n


def soft_entropy_ref(inputs, targets):
    log_q = jax.nn.log_softmax(inputs.astype(jnp.float32), axis=1)
    p = jax.nn.softmax(targets.astype(jnp.float32), axis=1)
    return jnp.sum(jnp.mean(-p * log_q, axis=0))


if __name__ == "__main__":
    key = jax.random.PRNGKey(0)
    k1, k2 = jax.random.split(key)
    N, C = 16, 128  # small batch of logits over C classes
    inputs = jax.random.normal(k1, (N, C), dtype=jnp.float32)
    targets = jax.random.normal(k2, (N, C), dtype=jnp.float32)

    loss = soft_entropy(inputs, targets)
    loss = jax.block_until_ready(loss)

    ref = soft_entropy_ref(inputs, targets)
    assert jnp.allclose(loss, ref, rtol=1e-4, atol=1e-5), (loss, ref)

    print("KERNEL_OK")
</pallas_src>

<mosaic_0001>
module attributes {stable_mosaic.version = 11 : i64} {
  func.func @_soft_entropy_kernel(%arg0: i32, %arg1: memref<16x128xf32, #tpu.memory_space<vmem>>, %arg2: memref<16x128xf32, #tpu.memory_space<vmem>>, %arg3: memref<16x1xf32, #tpu.memory_space<vmem>>) attributes {dimension_semantics = [#tpu.dimension_semantics<parallel>], iteration_bounds = array<i64: 1>, scalar_prefetch = 0 : i64, scratch_operands = 0 : i64, tpu.core_type = #tpu.core_type<tc>, window_params = [{transform_indices = @transform_0, window_bounds = array<i64: 16, 128>}, {transform_indices = @transform_1, window_bounds = array<i64: 16, 128>}, {transform_indices = @transform_2, window_bounds = array<i64: 16, 1>}]} {
    %c0 = arith.constant 0 : index
    %c0_0 = arith.constant 0 : index
    %0 = vector.load %arg1[%c0, %c0_0] : memref<16x128xf32, #tpu.memory_space<vmem>>, vector<16x128xf32>
    %c0_1 = arith.constant 0 : index
    %c0_2 = arith.constant 0 : index
    %1 = vector.load %arg2[%c0_1, %c0_2] : memref<16x128xf32, #tpu.memory_space<vmem>>, vector<16x128xf32>
    %cst = arith.constant dense<0xFF800000> : vector<16xf32>
    %2 = vector.multi_reduction <maximumf>, %0, %cst [1] : vector<16x128xf32> to vector<16xf32>
    %3 = vector.shape_cast %2 : vector<16xf32> to vector<16x1xf32>
    %4 = vector.broadcast %3 : vector<16x1xf32> to vector<16x128xf32>
    %5 = arith.subf %0, %4 : vector<16x128xf32>
    %6 = math.exp %5 : vector<16x128xf32>
    %cst_3 = arith.constant dense<0.000000e+00> : vector<16xf32>
    %7 = vector.multi_reduction <add>, %6, %cst_3 [1] : vector<16x128xf32> to vector<16xf32>
    %8 = vector.shape_cast %7 : vector<16xf32> to vector<16x1xf32>
    %9 = math.log %8 : vector<16x1xf32>
    %cst_4 = arith.constant dense<0xFF800000> : vector<16xf32>
    %10 = vector.multi_reduction <maximumf>, %1, %cst_4 [1] : vector<16x128xf32> to vector<16xf32>
    %11 = vector.shape_cast %10 : vector<16xf32> to vector<16x1xf32>
    %12 = vector.broadcast %11 : vector<16x1xf32> to vector<16x128xf32>
    %13 = arith.subf %1, %12 : vector<16x128xf32>
    %14 = math.exp %13 : vector<16x128xf32>
    %cst_5 = arith.constant dense<0.000000e+00> : vector<16xf32>
    %15 = vector.multi_reduction <add>, %14, %cst_5 [1] : vector<16x128xf32> to vector<16xf32>
    %16 = vector.shape_cast %15 : vector<16xf32> to vector<16x1xf32>
    %17 = arith.mulf %14, %5 : vector<16x128xf32>
    %cst_6 = arith.constant dense<0.000000e+00> : vector<16xf32>
    %18 = vector.multi_reduction <add>, %17, %cst_6 [1] : vector<16x128xf32> to vector<16xf32>
    %19 = vector.shape_cast %18 : vector<16xf32> to vector<16x1xf32>
    %20 = arith.divf %19, %16 : vector<16x1xf32>
    %21 = arith.subf %9, %20 : vector<16x1xf32>
    %c0_7 = arith.constant 0 : index
    %c0_8 = arith.constant 0 : index
    %22 = vector.load %arg3[%c0_7, %c0_8] : memref<16x1xf32, #tpu.memory_space<vmem>>, vector<16x1xf32>
    tpu.vector_store %arg3[%c0_7, %c0_8], %21 {strides = array<i32>} : memref<16x1xf32, #tpu.memory_space<vmem>>, vector<16x1xf32>,
    return
  }
  func.func @transform_0(%arg0: i32) -> (i32, i32) {
    %c0_i32 = arith.constant 0 : i32
    %c0_i32_0 = arith.constant 0 : i32
    return %arg0, %c0_i32 : i32, i32
  }
  func.func @transform_1(%arg0: i32) -> (i32, i32) {
    %c0_i32 = arith.constant 0 : i32
    %c0_i32_0 = arith.constant 0 : i32
    return %arg0, %c0_i32 : i32, i32
  }
  func.func @transform_2(%arg0: i32) -> (i32, i32) {
    %c0_i32 = arith.constant 0 : i32
    %c0_i32_0 = arith.constant 0 : i32
    return %arg0, %c0_i32 : i32, i32
  }
}

</mosaic_0001>

<bundles_post_ra>
// kernel: tpu_custom_call.1
= control target key start
LH: loop header
LB: loop body
LE: loop exit
PB: predicated region body
PF: predicated region fallthrough
CT: control target
= control target key end

     0   :  { %7 = vsyncpa [#allocation3], 0  ;;  %s191_s0 = inlined_call_operand.hbm [shape: f32[16,128], index: 0, kind: input, shape index: {}]   ;;  %s192_s1 = inlined_call_operand.hbm [shape: f32[16,128], index: 1, kind: input, shape index: {}]   ;;  %s193_s2 = inlined_call_operand.vmem [shape: f32[16,1], index: 2, kind: output, shape index: {}]  }
   0x1   :  { %8 = vsyncpa [#allocation5], 0  ;;  %s160_s9 = smov [#allocation2]  }
   0x2   :  { %s14_s10 = sshll.u32 %s160_s9, 4  ;;  %s15_s10 = int_to_ptr.vmem [resolvable:$true] %s14_s10 }
   0x3   :  { %s124_s11 = scalar_lea.vmem %s15_s10, 256  ;;  %p129_p1 = scmp.lt.s32.totalorder %s15_s10, %s15_s10 }
   0x4   :  { %p125_p0 = scmp.ne.s32.totalorder %s15_s10, %s124_s11  ;;  %p130_p2 = scmp.lt.s32.totalorder %s124_s11, %s124_s11 }
   0x6   :  { %p131_p3 = por %p130_p2, %p129_p1 }
   0x8   :  { %p132_p4 = pnand %p131_p3, %p125_p0 }
   0xa   :  { %135 = shalt.err (!%p132_p4)
}
   0xb   :  { %s161_s12 = smov 128   ;;  %s162_s13 = smov 8  }
   0xc   :  { %20 = dma.hbm_to_vmem [thread:$0]  %s191_s0, 256, %s15_s10, [#allocation3], %s161_s12, %s161_s12, %s162_s13  }
   0xd   :  { %s163_s16 = smov [#allocation4]  }
   0xe   :  { %s26_s17 = sshll.u32 %s163_s16, 4  ;;  %s27_s17 = int_to_ptr.vmem [resolvable:$true] %s26_s17 }
   0xf   :  { %s144_s18 = scalar_lea.vmem %s27_s17, 256  ;;  %p149_p6 = scmp.lt.s32.totalorder %s27_s17, %s27_s17 }
  0x10   :  { %p145_p5 = scmp.ne.s32.totalorder %s27_s17, %s144_s18  ;;  %p150_p7 = scmp.lt.s32.totalorder %s144_s18, %s144_s18 }
  0x12   :  { %p151_p8 = por %p150_p7, %p149_p6 }
  0x14   :  { %p152_p9 = pnand %p151_p8, %p145_p5 }
  0x16   :  { %155 = shalt.err (!%p152_p9)
}
  0x17   :  { %32 = dma.hbm_to_vmem [thread:$0]  %s192_s1, 256, %s27_s17, [#allocation5], %s161_s12, %s161_s12, %s162_s13  }
  0x18   :  { %156 = dma.done.wait [#allocation3], 256  }
  0x19   :  { %157 = vsyncadd [#allocation3], 4294967040 }
  0x1a   :  { %158 = dma.done.wait [#allocation5], 256  }
  0x1b   :  { %159 = vsyncadd [#allocation5], 4294967040  ;;  %v41_v0 = vld [vmem:[#allocation4] sm:$0xff]  ;;  %v39_v1 = vld [vmem:[#allocation2] sm:$0xff]  ;;  %vm87_vm0 = vcmask 7168  }
  0x1c   :  { %61 = vmax.xlane.f32.xlu1 %v41_v0  ;;  %43 = vmax.xlane.f32.xlu0 %v39_v1  ;;  %v42_v2 = vld [vmem:[#allocation4 + $0x8] sm:$0xff]  ;;  %v40_v3 = vld [vmem:[#allocation2 + $0x8] sm:$0xff] }
  0x20   :  { %63 = vmax.xlane.f32.xlu1 %v42_v2  ;;  %45 = vmax.xlane.f32.xlu0 %v40_v3 }
  0xa5   :  { %v62_v4 = vpop.xlane.xlu1 %61  ;;  %v44_v5 = vpop.xlane.xlu0 %43 }
  0xa6   :  { %v65_v6 = vsub.f32 %v41_v0, %v62_v4  ;;  %v47_v7 = vsub.f32 %v39_v1, %v44_v5 }
  0xa8   :  { %v49_v8 = vmul.f32 1.442695, %v47_v7  ;;  %v67_v11 = vmul.f32 1.442695, %v65_v6 }
  0xa9   :  { %v64_v9 = vpop.xlane.xlu1 %63  ;;  %v46_v10 = vpop.xlane.xlu0 %45 }
  0xaa   :  { %v48_v12 = vsub.f32 %v40_v3, %v46_v10  ;;  %100 = vpow2.f32 %v49_v8  ;;  %v66_v13 = vsub.f32 %v42_v2, %v64_v9 }
  0xab   :  { %102 = vpow2.f32 %v67_v11 }
  0xac   :  { %v51_v14 = vmul.f32 1.442695, %v48_v12  ;;  %v69_v15 = vmul.f32 1.442695, %v66_v13 }
  0xae   :  { %104 = vpow2.f32 %v51_v14 }
  0xaf   :  { %106 = vpow2.f32 %v69_v15 }
  0xb7   :  { %v101_v16 = vpop.eup %100 }
  0xb8   :  { %53 = vadd.xlane.f32.xlu0 %v101_v16  ;;  %v103_v17 = vpop.eup %102 }
  0xb9   :  { %v75_v19 = vmul.f32 %v103_v17, %v47_v7 }
  0xbb   :  { %v105_v18 = vpop.eup %104 }
  0xbc   :  { %71 = vadd.xlane.f32.xlu0 %v103_v17  ;;  %55 = vadd.xlane.f32.xlu1 %v105_v18  ;;  %v107_v20 = vpop.eup %106 }
  0xbd   :  { %v76_v21 = vmul.f32 %v107_v20, %v48_v12 }
  0xc0   :  { %77 = vadd.xlane.f32.xlu0 %v75_v19  ;;  %73 = vadd.xlane.f32.xlu1 %v107_v20 }
  0xc4   :  { %79 = vadd.xlane.f32.xlu1 %v76_v21 }
 0x141   :  { %v54_v22 = vpop.xlane.xlu0 %53 }
 0x142   :  { %108 = vlog2.f32 %v54_v22 }
 0x145   :  { %v56_v23 = vpop.xlane.xlu1 %55  ;;  %v72_v24 = vpop.xlane.xlu0 %71 }
 0x146   :  { %110 = vrcp.f32 %v72_v24 }
 0x147   :  { %112 = vlog2.f32 %v56_v23 }
 0x149   :  { %v74_v25 = vpop.xlane.xlu1 %73  ;;  %v78_v28 = vpop.xlane.xlu0 %77 }
 0x14a   :  { %114 = vrcp.f32 %v74_v25 }
 0x14d   :  { %v80_v34 = vpop.xlane.xlu1 %79 }
 0x14f   :  { %v109_v26 = vpop.eup %108 }
 0x150   :  { %v58_v30 = vmul.f32 0.6931472, %v109_v26 }
 0x153   :  { %v111_v27 = vpop.eup %110 }
 0x154   :  { %v113_v29 = vpop.eup %112  ;;  %v82_v31 = vmul.f32 %v111_v27, %v78_v28 }
 0x155   :  { %v60_v35 = vmul.f32 0.6931472, %v113_v29 }
 0x156   :  { %v85_v33 = vsub.f32 %v58_v30, %v82_v31 }
 0x157   :  { %v115_v32 = vpop.eup %114 }
 0x158   :  { %v84_v36 = vmul.f32 %v115_v32, %v80_v34  ;;  %88 = vst.msk [vmem:[%s193_s2] sm:$0xff] %vm87_vm0, %v85_v33 }
 0x15a   :  { %v86_v37 = vsub.f32 %v60_v35, %v84_v36 }
 0x15c   :  { %89 = vst.msk [vmem:[%s193_s2 + $0x8] sm:$0xff] %vm87_vm0, %v86_v37 }
 0x15d   :  { %94 = vsyncpa [#allocation3], 1 }
 0x15e   :  { %95 = vsyncpa [#allocation5], 1 }

</bundles_post_ra>
